<compile_context>
chip_gen: v7x
topology: tpu7x:2x2x1
jax: 0.10.0
libtpu: 0.0.40
codegen_flags: <defaults>
</compile_context>

<pallas_src>
import functools

import jax
import jax.numpy as jnp
import numpy as np
from jax.experimental import pallas as pl
from jax.experimental.pallas import tpu as pltpu


# --------------------------------------------------------------------------------------
# Pallas kernel: one (bb, C, H*W) batch-block per grid step.
# Channels on sublanes, spatial on lanes.
# --------------------------------------------------------------------------------------
def crm_kernel(masks_ref, x_ref, w_ref, b_ref, out_ref, *, C, bb, shifts):
    w = w_ref[...]                       # (2C, 9C)  fused conv weights
    b = b_ref[...]                       # (2C, 1)   fused bias (GWC bias; zeros for Y2)

    for ib in range(bb):                 # static, small batch fold
        x = x_ref[ib]                    # (C, HW)

        # Build the 9 shifted-and-masked copies of the image (im2col along sublanes).
        # pltpu.roll is an XLU lane rotation; the masks zero positions whose 3x3
        # neighbour falls outside the image (replaces explicit halo padding).
        pieces = []
        for t, sh in enumerate(shifts):
            if sh == 0:                  # centre tap: no shift, mask is all ones
                pieces.append(x)
            else:
                pieces.append(pltpu.roll(x, sh, axis=1) * masks_ref[t])
        xs = jnp.concatenate(pieces, axis=0)            # (9C, HW), sublane-tile aligned

        # Single fused matmul:
        #   rows :C  -> Y1 = GWC(squeeze1(up)) + bias + PWC1(squeeze1(up))
        #   rows C:  -> Y2 = concat(PWC2(squeeze2(low)), squeeze2(low))
        y = jnp.dot(w, xs, preferred_element_type=jnp.float32) + b      # (2C, HW)

        # AdaptiveAvgPool2d(1) -> softmax over the 2C channels -> rescale -> split+add.
        m = jnp.mean(y, axis=1, keepdims=True)          # (2C, 1)
        m = m - jnp.max(m, axis=0, keepdims=True)
        e = jnp.exp(m)
        # Exact reciprocal: it acts on a single (1,1) value per image, so approx=True
        # buys nothing and exact keeps the tight validation tolerance.
        s = e * pl.reciprocal(jnp.sum(e, axis=0, keepdims=True), approx=False)
        ys = y * s                                      # (2C, HW)

        out_ref[ib] = (ys[:C] + ys[C:]).astype(out_ref.dtype)


# --------------------------------------------------------------------------------------
# Wrapper (NCHW in / NCHW out, like the PyTorch module). No transposes, no padding.
# --------------------------------------------------------------------------------------
def crm_pallas(x_nchw, w_full, b_full, masks, shifts, *, batch_block=1):
    N, C, H, W = x_nchw.shape
    HW = H * W
    bb = batch_block
    assert N % bb == 0, "batch_block must divide the batch size"

    x = x_nchw.reshape(N, C, HW).astype(jnp.float32)    # free reshape (no transpose)

    kernel = functools.partial(crm_kernel, C=C, bb=bb, shifts=tuple(shifts))

    out = pl.pallas_call(
        kernel,
        out_shape=jax.ShapeDtypeStruct((N, C, HW), jnp.float32),
        grid_spec=pltpu.PrefetchScalarGridSpec(
            num_scalar_prefetch=0,
            grid=(N // bb,),
            in_specs=[
                pl.BlockSpec(masks.shape, lambda n: (0, 0, 0)),     # (9, 1, HW)
                pl.BlockSpec((bb, C, HW), lambda n: (n, 0, 0)),     # activations
                pl.BlockSpec(w_full.shape, lambda n: (0, 0)),       # (2C, 9C)
                pl.BlockSpec(b_full.shape, lambda n: (0, 0)),       # (2C, 1)
            ],
            out_specs=pl.BlockSpec((bb, C, HW), lambda n: (n, 0, 0)),
        ),
        compiler_params=pltpu.CompilerParams(
            dimension_semantics=("parallel",),
            vmem_limit_bytes=32 * 1024 * 1024,
        ),
    )(masks, x, w_full, b_full)

    return out.reshape(N, C, H, W)


# --------------------------------------------------------------------------------------
# Weight / mask preparation: fuse squeeze1/squeeze2 into GWC, PWC1, PWC2; fold PWC1 and
# the Y2 (PWC2 + identity) block into the centre tap; build boundary masks and shifts.
# --------------------------------------------------------------------------------------
def prepare_crm_params(tp, *, H, W, C, up_c, low_c, squeeze_radio, group_size):
    up_sq = up_c // squeeze_radio
    low_sq = low_c // squeeze_radio

    S1 = np.asarray(tp["w_sq1"], np.float64)[:, :, 0, 0]     # (up_sq, up_c)
    S2 = np.asarray(tp["w_sq2"], np.float64)[:, :, 0, 0]     # (low_sq, low_c)
    P1 = np.asarray(tp["w_pwc1"], np.float64)[:, :, 0, 0]    # (C, up_sq)
    P2 = np.asarray(tp["w_pwc2"], np.float64)[:, :, 0, 0]    # (C - low_sq, low_sq)
    Gg = np.asarray(tp["w_gwc"], np.float64)                 # (C, up_sq//groups, 3, 3)
    bg = np.asarray(tp["b_gwc"], np.float64)                 # (C,)

    # Densify the grouped 3x3 weight (zeros across groups).
    in_per_g = up_sq // group_size
    out_per_g = C // group_size
    G = np.zeros((C, up_sq, 3, 3), np.float64)
    for g in range(group_size):
        G[g * out_per_g:(g + 1) * out_per_g,
          g * in_per_g:(g + 1) * in_per_g] = Gg[g * out_per_g:(g + 1) * out_per_g]

    HW = H * W
    n_taps = 9
    w_full = np.zeros((2 * C, n_taps * C), np.float64)
    masks = np.zeros((n_taps, 1, HW), np.float32)
    shifts = []

    yy, xx = np.meshgrid(np.arange(H), np.arange(W), indexing="ij")
    yy = yy.reshape(-1)
    xx = xx.reshape(-1)

    for t in range(n_taps):
        ky, kx = divmod(t, 3)
        dy, dx = ky - 1, kx - 1
        off = dy * W + dx
        shifts.append(int((-off) % HW))
        valid = (yy + dy >= 0) & (yy + dy < H) & (xx + dx >= 0) & (xx + dx < W)
        masks[t, 0, :] = valid.astype(np.float32)
        # GWC tap fused with squeeze1; acts on the "up" channels of the shifted image.
        w_full[:C, t * C:t * C + up_c] = G[:, :, ky, kx] @ S1

    center = 4  # ky=1, kx=1 -> shift 0, all-ones mask
    w_full[:C, center * C:center * C + up_c] += P1 @ S1                       # PWC1
    w_full[C:2 * C - low_sq, center * C + up_c:center * C + C] = P2 @ S2      # PWC2
    w_full[2 * C - low_sq:, center * C + up_c:center * C + C] = S2            # identity

    b_full = np.concatenate([bg, np.zeros((C,), np.float64)]).reshape(2 * C, 1)

    return (jnp.asarray(w_full.astype(np.float32)),
            jnp.asarray(b_full.astype(np.float32)),
            jnp.asarray(masks),
            tuple(shifts))


# --------------------------------------------------------------------------------------
# Pure-JAX reference (mirrors the PyTorch forward exactly, NCHW / OIHW)
# --------------------------------------------------------------------------------------
def crm_reference(x, torch_params, *, up_c, low_c, group_size):
    dn = ("NCHW", "OIHW", "NCHW")

    def conv(inp, w, padding, groups=1):
        return jax.lax.conv_general_dilated(
            inp, w, (1, 1), padding, dimension_numbers=dn, feature_group_count=groups)

    w_sq1, w_sq2 = torch_params["w_sq1"], torch_params["w_sq2"]
    w_gwc, b_gwc = torch_params["w_gwc"], torch_params["b_gwc"]
    w_pwc1, w_pwc2 = torch_params["w_pwc1"], torch_params["w_pwc2"]

    up, low = x[:, :up_c], x[:, up_c:]
    up = conv(up, w_sq1, "VALID")
    low = conv(low, w_sq2, "VALID")
    y1 = conv(up, w_gwc, [(1, 1), (1, 1)], groups=group_size) + b_gwc.reshape(1, -1, 1, 1)
    y1 = y1 + conv(up, w_pwc1, "VALID")
    y2 = jnp.concatenate([conv(low, w_pwc2, "VALID"), low], axis=1)
    out = jnp.concatenate([y1, y2], axis=1)
    avg = jnp.mean(out, axis=(2, 3), keepdims=True)
    out = jax.nn.softmax(avg, axis=1) * out
    c2 = out.shape[1] // 2
    return out[:, :c2] + out[:, c2:]


# --------------------------------------------------------------------------------------
# Main
# --------------------------------------------------------------------------------------
if __name__ == "__main__":
    # Module hyperparameters (up_c // squeeze_radio must be divisible by group_size=2).
    op_channel = 8
    alpha, squeeze_radio, group_size, gks = 0.5, 2, 2, 3
    up_c = int(alpha * op_channel)            # 4
    low_c = op_channel - up_c                 # 4
    up_sq = up_c // squeeze_radio             # 2
    low_sq = low_c // squeeze_radio           # 2
    C = op_channel

    N, H, W = 2, 16, 16

    key = jax.random.PRNGKey(0)
    kx, k1, k2, k3, k4, k5, k6 = jax.random.split(key, 7)

    x = jax.random.normal(kx, (N, C, H, W), dtype=jnp.float32)

    # PyTorch-layout (OIHW) parameters, deterministic.
    w_sq1 = 0.1 * jax.random.normal(k1, (up_sq, up_c, 1, 1), dtype=jnp.float32)
    w_sq2 = 0.1 * jax.random.normal(k2, (low_sq, low_c, 1, 1), dtype=jnp.float32)
    w_gwc = 0.1 * jax.random.normal(k3, (C, up_sq // group_size, gks, gks), dtype=jnp.float32)
    b_gwc = 0.1 * jax.random.normal(k4, (C,), dtype=jnp.float32)
    w_pwc1 = 0.1 * jax.random.normal(k5, (C, up_sq, 1, 1), dtype=jnp.float32)
    w_pwc2 = 0.1 * jax.random.normal(k6, (C - low_sq, low_sq, 1, 1), dtype=jnp.float32)

    torch_params = dict(w_sq1=w_sq1, w_sq2=w_sq2, w_gwc=w_gwc, b_gwc=b_gwc,
                        w_pwc1=w_pwc1, w_pwc2=w_pwc2)

    w_full, b_full, masks, shifts = prepare_crm_params(
        torch_params, H=H, W=W, C=C, up_c=up_c, low_c=low_c,
        squeeze_radio=squeeze_radio, group_size=group_size)

    out_pallas = crm_pallas(x, w_full, b_full, masks, shifts, batch_block=1)
    out_pallas = jax.block_until_ready(out_pallas)

    out_ref = crm_reference(x, torch_params, up_c=up_c, low_c=low_c, group_size=group_size)
    out_ref = jax.block_until_ready(out_ref)

    np.testing.assert_allclose(np.asarray(out_pallas), np.asarray(out_ref),
                               rtol=1e-4, atol=1e-5)
    print("KERNEL_OK")
</pallas_src>

<mosaic_0001>
module attributes {stable_mosaic.version = 11 : i64} {
  func.func @crm_kernel(%arg0: i32, %arg1: memref<9x1x256xf32, #tpu.memory_space<vmem>>, %arg2: memref<1x8x256xf32, #tpu.memory_space<vmem>>, %arg3: memref<16x72xf32, #tpu.memory_space<vmem>>, %arg4: memref<16x1xf32, #tpu.memory_space<vmem>>, %arg5: memref<1x8x256xf32, #tpu.memory_space<vmem>>) attributes {dimension_semantics = [#tpu.dimension_semantics<parallel>], iteration_bounds = array<i64: 2>, scalar_prefetch = 0 : i64, scratch_operands = 0 : i64, tpu.core_type = #tpu.core_type<tc>, window_params = [{pipeline_mode = #tpu.pipeline_mode<synchronous>, transform_indices = @transform_0, window_bounds = array<i64: 9, 1, 256>}, {transform_indices = @transform_1, window_bounds = array<i64: 1, 8, 256>}, {pipeline_mode = #tpu.pipeline_mode<synchronous>, transform_indices = @transform_2, window_bounds = array<i64: 16, 72>}, {pipeline_mode = #tpu.pipeline_mode<synchronous>, transform_indices = @transform_3, window_bounds = array<i64: 16, 1>}, {transform_indices = @transform_4, window_bounds = array<i64: 1, 8, 256>}]} {
    %c0 = arith.constant 0 : index
    %c0_0 = arith.constant 0 : index
    %0 = vector.load %arg3[%c0, %c0_0] : memref<16x72xf32, #tpu.memory_space<vmem>>, vector<16x72xf32>
    %c0_1 = arith.constant 0 : index
    %c0_2 = arith.constant 0 : index
    %1 = vector.load %arg4[%c0_1, %c0_2] : memref<16x1xf32, #tpu.memory_space<vmem>>, vector<16x1xf32>
    %c0_3 = arith.constant 0 : index
    %c0_4 = arith.constant 0 : index
    %c0_5 = arith.constant 0 : index
    %2 = vector.load %arg2[%c0_3, %c0_4, %c0_5] : memref<1x8x256xf32, #tpu.memory_space<vmem>>, vector<1x8x256xf32>
    %3 = vector.shape_cast %2 : vector<1x8x256xf32> to vector<8x256xf32>
    %c17_i32 = arith.constant 17 : i32
    %4 = tpu.dynamic_rotate %3 by %c17_i32 dim 1 : vector<8x256xf32>, i32 -> vector<8x256xf32>
    %c0_6 = arith.constant 0 : index
    %c0_7 = arith.constant 0 : index
    %c0_8 = arith.constant 0 : index
    %5 = vector.load %arg1[%c0_6, %c0_7, %c0_8] : memref<9x1x256xf32, #tpu.memory_space<vmem>>, vector<1x1x256xf32>
    %6 = vector.shape_cast %5 : vector<1x1x256xf32> to vector<1x256xf32>
    %7 = vector.broadcast %6 : vector<1x256xf32> to vector<8x256xf32>
    %8 = arith.mulf %4, %7 : vector<8x256xf32>
    %c16_i32 = arith.constant 16 : i32
    %9 = tpu.dynamic_rotate %3 by %c16_i32 dim 1 : vector<8x256xf32>, i32 -> vector<8x256xf32>
    %c1 = arith.constant 1 : index
    %c0_9 = arith.constant 0 : index
    %c0_10 = arith.constant 0 : index
    %10 = vector.load %arg1[%c1, %c0_9, %c0_10] : memref<9x1x256xf32, #tpu.memory_space<vmem>>, vector<1x1x256xf32>
    %11 = vector.shape_cast %10 : vector<1x1x256xf32> to vector<1x256xf32>
    %12 = vector.broadcast %11 : vector<1x256xf32> to vector<8x256xf32>
    %13 = arith.mulf %9, %12 : vector<8x256xf32>
    %c15_i32 = arith.constant 15 : i32
    %14 = tpu.dynamic_rotate %3 by %c15_i32 dim 1 : vector<8x256xf32>, i32 -> vector<8x256xf32>
    %c2 = arith.constant 2 : index
    %c0_11 = arith.constant 0 : index
    %c0_12 = arith.constant 0 : index
    %15 = vector.load %arg1[%c2, %c0_11, %c0_12] : memref<9x1x256xf32, #tpu.memory_space<vmem>>, vector<1x1x256xf32>
    %16 = vector.shape_cast %15 : vector<1x1x256xf32> to vector<1x256xf32>
    %17 = vector.broadcast %16 : vector<1x256xf32> to vector<8x256xf32>
    %18 = arith.mulf %14, %17 : vector<8x256xf32>
    %c1_i32 = arith.constant 1 : i32
    %19 = tpu.dynamic_rotate %3 by %c1_i32 dim 1 : vector<8x256xf32>, i32 -> vector<8x256xf32>
    %c3 = arith.constant 3 : index
    %c0_13 = arith.constant 0 : index
    %c0_14 = arith.constant 0 : index
    %20 = vector.load %arg1[%c3, %c0_13, %c0_14] : memref<9x1x256xf32, #tpu.memory_space<vmem>>, vector<1x1x256xf32>
    %21 = vector.shape_cast %20 : vector<1x1x256xf32> to vector<1x256xf32>
    %22 = vector.broadcast %21 : vector<1x256xf32> to vector<8x256xf32>
    %23 = arith.mulf %19, %22 : vector<8x256xf32>
    %c255_i32 = arith.constant 255 : i32
    %24 = tpu.dynamic_rotate %3 by %c255_i32 dim 1 : vector<8x256xf32>, i32 -> vector<8x256xf32>
    %c5 = arith.constant 5 : index
    %c0_15 = arith.constant 0 : index
    %c0_16 = arith.constant 0 : index
    %25 = vector.load %arg1[%c5, %c0_15, %c0_16] : memref<9x1x256xf32, #tpu.memory_space<vmem>>, vector<1x1x256xf32>
    %26 = vector.shape_cast %25 : vector<1x1x256xf32> to vector<1x256xf32>
    %27 = vector.broadcast %26 : vector<1x256xf32> to vector<8x256xf32>
    %28 = arith.mulf %24, %27 : vector<8x256xf32>
    %c241_i32 = arith.constant 241 : i32
    %29 = tpu.dynamic_rotate %3 by %c241_i32 dim 1 : vector<8x256xf32>, i32 -> vector<8x256xf32>
    %c6 = arith.constant 6 : index
    %c0_17 = arith.constant 0 : index
    %c0_18 = arith.constant 0 : index
    %30 = vector.load %arg1[%c6, %c0_17, %c0_18] : memref<9x1x256xf32, #tpu.memory_space<vmem>>, vector<1x1x256xf32>
    %31 = vector.shape_cast %30 : vector<1x1x256xf32> to vector<1x256xf32>
    %32 = vector.broadcast %31 : vector<1x256xf32> to vector<8x256xf32>
    %33 = arith.mulf %29, %32 : vector<8x256xf32>
    %c240_i32 = arith.constant 240 : i32
    %34 = tpu.dynamic_rotate %3 by %c240_i32 dim 1 : vector<8x256xf32>, i32 -> vector<8x256xf32>
    %c7 = arith.constant 7 : index
    %c0_19 = arith.constant 0 : index
    %c0_20 = arith.constant 0 : index
    %35 = vector.load %arg1[%c7, %c0_19, %c0_20] : memref<9x1x256xf32, #tpu.memory_space<vmem>>, vector<1x1x256xf32>
    %36 = vector.shape_cast %35 : vector<1x1x256xf32> to vector<1x256xf32>
    %37 = vector.broadcast %36 : vector<1x256xf32> to vector<8x256xf32>
    %38 = arith.mulf %34, %37 : vector<8x256xf32>
    %c239_i32 = arith.constant 239 : i32
    %39 = tpu.dynamic_rotate %3 by %c239_i32 dim 1 : vector<8x256xf32>, i32 -> vector<8x256xf32>
    %c8 = arith.constant 8 : index
    %c0_21 = arith.constant 0 : index
    %c0_22 = arith.constant 0 : index
    %40 = vector.load %arg1[%c8, %c0_21, %c0_22] : memref<9x1x256xf32, #tpu.memory_space<vmem>>, vector<1x1x256xf32>
    %41 = vector.shape_cast %40 : vector<1x1x256xf32> to vector<1x256xf32>
    %42 = vector.broadcast %41 : vector<1x256xf32> to vector<8x256xf32>
    %43 = arith.mulf %39, %42 : vector<8x256xf32>
    %44 = tpu.concatenate %8, %13, %18, %23, %3, %28, %33, %38, %43 in 0 : vector<8x256xf32>, vector<8x256xf32>, vector<8x256xf32>, vector<8x256xf32>, vector<8x256xf32>, vector<8x256xf32>, vector<8x256xf32>, vector<8x256xf32>, vector<8x256xf32> -> vector<72x256xf32>
    %cst = arith.constant dense<0.000000e+00> : vector<16x256xf32>
    %45 = tpu.matmul %0, %44, %cst {dimension_numbers = #tpu.dot_dimension_numbers<[1], [0], [0], [1], [0, 0, 1, 1], [], []>} : vector<16x72xf32>, vector<72x256xf32>, vector<16x256xf32> -> vector<16x256xf32>
    %46 = vector.broadcast %1 : vector<16x1xf32> to vector<16x256xf32>
    %47 = arith.addf %45, %46 : vector<16x256xf32>
    %cst_23 = arith.constant dense<0.000000e+00> : vector<16xf32>
    %48 = vector.multi_reduction <add>, %47, %cst_23 [1] : vector<16x256xf32> to vector<16xf32>
    %49 = vector.shape_cast %48 : vector<16xf32> to vector<16x1xf32>
    %cst_24 = arith.constant 2.560000e+02 : f32
    %50 = vector.broadcast %cst_24 : f32 to vector<16x1xf32>
    %51 = arith.divf %49, %50 : vector<16x1xf32>
    %cst_25 = arith.constant dense<0xFF800000> : vector<1xf32>
    %52 = vector.multi_reduction <maximumf>, %51, %cst_25 [0] : vector<16x1xf32> to vector<1xf32>
    %53 = vector.shape_cast %52 : vector<1xf32> to vector<1x1xf32>
    %54 = vector.broadcast %53 : vector<1x1xf32> to vector<16x1xf32>
    %55 = arith.subf %51, %54 : vector<16x1xf32>
    %56 = math.exp %55 : vector<16x1xf32>
    %cst_26 = arith.constant dense<0.000000e+00> : vector<1xf32>
    %57 = vector.multi_reduction <add>, %56, %cst_26 [0] : vector<16x1xf32> to vector<1xf32>
    %58 = vector.shape_cast %57 : vector<1xf32> to vector<1x1xf32>
    %59 = tpu.reciprocal %58 : vector<1x1xf32> -> vector<1x1xf32>
    %60 = vector.broadcast %59 : vector<1x1xf32> to vector<16x1xf32>
    %61 = arith.mulf %56, %60 : vector<16x1xf32>
    %62 = vector.broadcast %61 : vector<16x1xf32> to vector<16x256xf32>
    %63 = arith.mulf %47, %62 : vector<16x256xf32>
    %64 = vector.extract_strided_slice %63 {offsets = [0, 0], sizes = [8, 256], strides = [1, 1]} : vector<16x256xf32> to vector<8x256xf32>
    %65 = vector.extract_strided_slice %63 {offsets = [8, 0], sizes = [8, 256], strides = [1, 1]} : vector<16x256xf32> to vector<8x256xf32>
    %66 = arith.addf %64, %65 : vector<8x256xf32>
    %c0_27 = arith.constant 0 : index
    %c0_28 = arith.constant 0 : index
    %c0_29 = arith.constant 0 : index
    %67 = vector.load %arg5[%c0_27, %c0_28, %c0_29] : memref<1x8x256xf32, #tpu.memory_space<vmem>>, vector<1x8x256xf32>
    %68 = vector.shape_cast %67 : vector<1x8x256xf32> to vector<8x256xf32>
    %69 = vector.shape_cast %66 : vector<8x256xf32> to vector<1x8x256xf32>
    tpu.vector_store %arg5[%c0_27, %c0_28, %c0_29], %69 {strides = array<i32>} : memref<1x8x256xf32, #tpu.memory_space<vmem>>, vector<1x8x256xf32>,
    return
  }
  func.func @transform_0(%arg0: i32) -> (i32, i32, i32) {
    %c0_i32 = arith.constant 0 : i32
    %c0_i32_0 = arith.constant 0 : i32
    %c0_i32_1 = arith.constant 0 : i32
    %c0_i32_2 = arith.constant 0 : i32
    return %c0_i32, %c0_i32_0, %c0_i32_1 : i32, i32, i32
  }
  func.func @transform_1(%arg0: i32) -> (i32, i32, i32) {
    %c0_i32 = arith.constant 0 : i32
    %c0_i32_0 = arith.constant 0 : i32
    %c0_i32_1 = arith.constant 0 : i32
    return %arg0, %c0_i32, %c0_i32_0 : i32, i32, i32
  }
  func.func @transform_2(%arg0: i32) -> (i32, i32) {
    %c0_i32 = arith.constant 0 : i32
    %c0_i32_0 = arith.constant 0 : i32
    %c0_i32_1 = arith.constant 0 : i32
    return %c0_i32, %c0_i32_0 : i32, i32
  }
  func.func @transform_3(%arg0: i32) -> (i32, i32) {
    %c0_i32 = arith.constant 0 : i32
    %c0_i32_0 = arith.constant 0 : i32
    %c0_i32_1 = arith.constant 0 : i32
    return %c0_i32, %c0_i32_0 : i32, i32
  }
  func.func @transform_4(%arg0: i32) -> (i32, i32, i32) {
    %c0_i32 = arith.constant 0 : i32
    %c0_i32_0 = arith.constant 0 : i32
    %c0_i32_1 = arith.constant 0 : i32
    return %arg0, %c0_i32, %c0_i32_0 : i32, i32, i32
  }
}

</mosaic_0001>

<bundles_post_ra>
// kernel: tpu_custom_call.1
= control target key start
LH: loop header
LB: loop body
LE: loop exit
PB: predicated region body
PF: predicated region fallthrough
CT: control target
= control target key end

     0   :  { %9 = vsyncpa [#allocation3], 0  ;;  %s1200_s0 = inlined_call_operand.hbm [shape: f32[9,1,256], index: 0, kind: input, shape index: {}]   ;;  %s1201_s1 = inlined_call_operand.hbm [shape: f32[2,8,256], index: 1, kind: input, shape index: {}]   ;;  %s1202_s2 = inlined_call_operand.vmem [shape: f32[16,72], index: 2, kind: input, shape index: {}]   ;;  %s1203_s3 = inlined_call_operand.vmem [shape: f32[16,1], index: 3, kind: input, shape index: {}]   ;;  %s1204_s4 = inlined_call_operand.hbm [shape: f32[2,8,256], index: 4, kind: output, shape index: {}]  }
   0x1   :  { %10 = vsyncpa [#allocation6], 0 }
   0x2   :  { %12 = vsyncpa [#allocation6 + $0x1], 0 }
   0x3   :  { %13 = vsyncpa [#allocation4], 0 }
   0x4   :  { %15 = vsyncpa [#allocation4 + $0x1], 0  ;;  %s936_s15 = smov 0   ;;  %s938_s16 = smov 0  }
   0x5   :  { %s940_s17 = smov 0   ;;  %s942_s18 = smov 0  }
   0x6 LB: > { %s957_s19 = sadd.s32 4294967295, %s894_s18   ;;  %s643_s20 = sadd.s32 4294967294, %s894_s18   ;;  %s894_s18 = sphi %s942_s18, %s1224_s18   ;;  %s890_s17 = sphi %s940_s17, %s1223_s17   ;;  %s886_s16 = sphi %s938_s16, %s1222_s16   ;;  %s882_s15 = sphi %s936_s15, %s1221_s15  }
   0x7   : > { %p62_p0 = scmp.ne.s32.totalorder %s886_s16, %s882_s15  ;;  %p1205_p1 = scmp.eq.s32.totalorder %s957_s19, 0 }
   0x8   : > { %p134_p3 = scmp.eq.s32.totalorder %s643_s20, 1  ;;  %p644_p5 = scmp.ge.s32.totalorder %s894_s18, 1 }
   0x9   : > { %p966_p4 = por %p1205_p1, %p62_p0  ;;  %p141_p7 = scmp.lt.s32.totalorder %s894_s18, 3 }
   0xa   : > { %p971_p6 = por %p134_p3, %p62_p0  ;;  %s896_s24 = smov [#allocation2]  }
   0xb   : > { %s1208_s21 = scalar_select %p966_p4, 1, 0 }
   0xc   : > { %s1209_s22 = scalar_select %p971_p6, 1, 0 }
   0xd   : > { %p976_p8 = pnand %p644_p5, %p141_p7  ;;  %s153_s25 = sshll.u32 %s896_s24, 4  ;;  %s980_s25 = int_to_ptr.vmem [resolvable:$true] %s153_s25 }
   0xe   : > { %s992_s27 = sadd.s32 1, %s894_s18   ;;  %s49_s28 = sadd.s32 1, %s890_s17 }
   0xf   : > { %s1210_s23 = scalar_select %p976_p8, 1, 0 }
  0x10   : > { %p697_p9 = pneg %p976_p8  ;;  %s46_s29 = ssub.s32 %s894_s18, %s992_s27 }
  0x11   : > { %s766_s6 = scalar_lea.hbm %s1200_s0, 288 }
  0x12   : > { %p987_p11 = pnand %p697_p9, %p1205_p1  ;;  %p767_p12 = scmp.ne.s32.totalorder %s1200_s0, %s766_s6 }
  0x13   : > { %p773_p5 = scmp.lt.u32.totalorder %s766_s6, %s1200_s0 }
  0x14   : > { %p768_p13 = pneg %p987_p11 }
  0x16   : > { %p769_p0 = pnand %p768_p13, %p767_p12 }
  0x18   : > { %p770_p3 = pneg %p769_p0 }
  0x1a   : > { %p775_p7 = pnand %p773_p5, %p770_p3 }
  0x1c   : > { %778 = shalt.err (!%p775_p7)
}
  0x1d   : > { %s779_s11 = scalar_lea.vmem %s980_s25, 288  ;;  %p787_p2 = scmp.lt.s32.totalorder %s980_s25, %s980_s25 }
  0x1e   : > { %p780_p9 = scmp.ne.s32.totalorder %s980_s25, %s779_s11  ;;  %p788_p6 = scmp.lt.s32.totalorder %s779_s11, %s779_s11 }
  0x20   : > { %p782_p10 = pnand %p780_p9, %p768_p13  ;;  %p789_p4 = por %p788_p6, %p787_p2 }
  0x22   : > { %p783_p1 = pneg %p782_p10 }
  0x24   : > { %p790_p8 = pnand %p789_p4, %p783_p1 }
  0x26   : > { %793 = shalt.err (!%p790_p8)
}
  0x27   : > { %s897_s12 = smov 32   ;;  %s898_s13 = smov 2  }
  0x28   : > { %700 = dma.hbm_to_vmem [thread:$0]  (!%p987_p11), %s1200_s0, 288, %s980_s25, [#allocation3], %s897_s12, %s897_s12, %s898_s13  }
  0x29   : > { %p47_p2 = scmp.eq.s32.totalorder %s46_s29, 0  ;;  %p56_p1 = scmp.ne.s32.totalorder %s890_s17, %s886_s16 }
  0x2a   : > { %p57_p4 = scmp.eq.s32.totalorder %s894_s18, 0  ;;  %p710_p6 = scmp.lt.s32.totalorder %s894_s18, 2 }
  0x2b   : > { %s1023_s24 = scalar_select %p47_p2, %s890_s17, %s49_s28  }
  0x2c   : > { %p58_p8 = por %p57_p4, %p56_p1  ;;  %p1212_p10 = scmp.eq.s32.totalorder %s957_s19, 1 }
  0x2d   : > { %s173_s5 = sand.u32 1, %s890_s17   ;;  %s661_s6 = sshll.u32 %s894_s18, 8 }
  0x2e   : > { %p1027_p12 = por %p1212_p10, %p56_p1  ;;  %s647_s7 = sshll.u32 %s173_s5, 4 }
  0x2f   : > { %s1036_s9 = scalar_lea.hbm %s1201_s1, %s661_s6  ;;  %s177_s25 = scalar_lea.vmem [#allocation5], %s647_s7 }
  0x30   : > { %s185_s28 = sshll.u32 %s177_s25, 4  ;;  %p1038_p11 = pnand %p710_p6, %p58_p8  ;;  %s1042_s28 = int_to_ptr.vmem [resolvable:$true] %s185_s28 }
  0x31   : > { %s174_s10 = scalar_lea.sflag [#allocation6], %s173_s5  ;;  %s794_s11 = scalar_lea.hbm %s1036_s9, 256 }
  0x32   : > { %p795_p13 = scmp.ne.s32.totalorder %s1036_s9, %s794_s11  ;;  %p796_p0 = pneg %p1038_p11 }
  0x33   : > { %s799_s14 = scalar_lea.hbm %s1201_s1, 512  ;;  %p800_p7 = scmp.lt.u32.totalorder %s1036_s9, %s1201_s1 }
  0x34   : > { %p797_p3 = pnand %p796_p0, %p795_p13  ;;  %p801_p9 = scmp.lt.u32.totalorder %s799_s14, %s794_s11 }
  0x35   : > { %p803_p1 = scmp.lt.u32.totalorder %s794_s11, %s1036_s9 }
  0x36   : > { %p798_p5 = pneg %p797_p3  ;;  %p802_p2 = por %p801_p9, %p800_p7 }
  0x38   : > { %p804_p4 = por %p803_p1, %p802_p2 }
  0x3a   : > { %p805_p6 = pnand %p804_p4, %p798_p5 }
  0x3c   : > { %808 = shalt.err (!%p805_p6)
}
  0x3d   : > { %s809_s5 = scalar_lea.vmem %s1042_s28, 256  ;;  %s899_s7 = smov [#allocation5]  }
  0x3e   : > { %p810_p8 = scmp.ne.s32.totalorder %s1042_s28, %s809_s5  ;;  %s814_s26 = sshll.u32 %s899_s7, 4  ;;  %s815_s26 = int_to_ptr.vmem [resolvable:$false] %s814_s26 }
  0x3f   : > { %s816_s8 = scalar_lea.vmem %s815_s26, 512  ;;  %p817_p3 = scmp.lt.s32.totalorder %s1042_s28, %s815_s26 }
  0x40   : > { %p812_p10 = pnand %p810_p8, %p796_p0  ;;  %p818_p7 = scmp.lt.s32.totalorder %s816_s8, %s809_s5 }
  0x42   : > { %p813_p13 = pneg %p812_p10  ;;  %p819_p9 = por %p818_p7, %p817_p3 }
  0x44   : > { %p820_p2 = pnand %p819_p9, %p813_p13 }
  0x46   : > { %823 = shalt.err (!%p820_p2)
}
  0x47   : > { %704 = dma.hbm_to_vmem [thread:$0]  (!%p1038_p11), %s1036_s9, 256, %s1042_s28, %s174_s10  }
  0x48   : > { %p1215_p5 = scmp.ne.s32.totalorder %s1210_s23, 0 }
  0x49   : > { %p1216_p0 = scmp.eq.s32.totalorder (!%p1215_p5), %s957_s19, 0 }
  0x4a   : > { %194 = sbr.rel (%p1215_p5) target bundleno = 673 (0x2a1), region = 36 }
  0x51   : > { %869 = dma.done.wait (%p1216_p0), [#allocation3], 288   ;;  %p1217_p1 = pmov %p1216_p0 }
  0x52   : > { %s1076_s25 = sand.u32 1, %s886_s16   ;;  %p1218_p11 = scmp.ne.s32.totalorder %s1208_s21, 0 }
  0x53   : > { %871 = vsyncadd (%p1217_p1), [#allocation3], 4294967008  ;;  %s652_s29 = sshll.u32 %s1076_s25, 4  ;;  %s201_s11 = scalar_lea.sflag [#allocation6], %s1076_s25 }
  0x54   : > { %s204_s9 = scalar_lea.vmem [#allocation5], %s652_s29 }
  0x55   : > { %873 = dma.done.wait (%p1218_p11), %s201_s11, 256  }
  0x56   : > { %875 = vsyncadd (%p1218_p11), %s201_s11, 4294967040  ;;  %v1086_v0 = vld [vmem:[%s204_s9] sm:$0xff]  ;;  %s900_s23 = smov 16   ;;  %s901_s28 = smov 17   ;;  %v1090_v1 = vld [vmem:[%s204_s9 + $0x8] sm:$0xff]  ;;  %v906_v2 = vmov 0.0   ;;  %v239_v6 = vlaneseq }
  0x57   : > { %258 = vrot.lane.b32.xlu1 %v1086_v0, %s900_s23  ;;  %235 = vrot.lane.b32.xlu0 %v1086_v0, %s901_s28  ;;  %s902_s10 = smov 15   ;;  %s903_s21 = smov 1   ;;  %v907_v3 = vmov 0   ;;  %v232_v4 = vld [vmem:[%s1203_s3 + $0x8] sm:$0xff]  ;;  %v231_v5 = vld [vmem:[%s1203_s3] sm:$0xff]  ;;  %vm422_vm8 = vcmask 588800  }
  0x58   : > { %s904_s12 = smov 127   ;;  %s905_s13 = smov 113   ;;  %493 = vmatprep.mubr.f32.mxu0 %v906_v2  ;;  %499 = vmatprep.mubr.f32.mxu1 %v906_v2  ;;  %v247_v7 = vshrl.u32 %v239_v6, 7  ;;  %v1112_v8 = vand.u32 127, %v239_v6  ;;  %v266_v11 = vld [vmem:[#allocation2 + $0x2] sm:$0x3] }
  0x59   : > { %759 = vset.pattern.permute.xlu1 %v907_v3  ;;  %758 = vset.pattern.permute.xlu0 %v907_v3  ;;  %s908_s14 = smov 112   ;;  %s909_s20 = smov 111   ;;  %v244_v12 = vld [vmem:[#allocation2] sm:$0x3]  ;;  %v288_v29 = vld [vmem:[#allocation2 + $0x4] sm:$0x3] }
  0x5a   : > { %v1114_v9 = vsub.s32 0, %v247_v7  ;;  %v1116_v10 = vsub.s32 1, %v247_v7  ;;  %vm262_vm0 = vcmp.lt.s32.totalorder %v1112_v8, 16  ;;  %vm241_vm1 = vcmp.lt.s32.totalorder %v1112_v8, 17  ;;  %v310_v30 = vld [vmem:[#allocation2 + $0x6] sm:$0x3] }
  0x5b   : > { %260 = vrot.lane.b32.xlu1 %v1090_v1, %s900_s23  ;;  %237 = vrot.lane.b32.xlu0 %v1090_v1, %s901_s28  ;;  %vm284_vm2 = vcmp.lt.s32.totalorder %v1112_v8, 15  ;;  %vm306_vm3 = vcmp.lt.s32.totalorder %v1112_v8, 1  ;;  %v332_v39 = vld [vmem:[#allocation2 + $0xa] sm:$0x3]  ;;  %vm328_vm4 = vcmp.lt.s32.totalorder %v1112_v8, 127  ;;  %vm350_vm5 = vcmp.lt.s32.totalorder %v1112_v8, 113 }
  0x5c   : > { %v271_v15 = vrot.slane %v266_v11, %v1114_v9  ;;  %v275_v16 = vrot.slane %v266_v11, %v1116_v10  ;;  %v249_v17 = vrot.slane %v244_v12, %v1114_v9  ;;  %v253_v18 = vrot.slane %v244_v12, %v1116_v10  ;;  %v354_v60 = vld [vmem:[#allocation2 + $0xc] sm:$0x3]  ;;  %v376_v61 = vld [vmem:[#allocation2 + $0xe] sm:$0x3]  ;;  %v398_v11 = vld [vmem:[#allocation2 + $0x10] sm:$0x3] }
  0x5d   : > { %v293_v35 = vrot.slane %v288_v29, %v1114_v9  ;;  %v297_v36 = vrot.slane %v288_v29, %v1116_v10  ;;  %v315_v37 = vrot.slane %v310_v30, %v1114_v9  ;;  %v319_v38 = vrot.slane %v310_v30, %v1116_v10  ;;  %s662_s28 = sshll.u32 %s957_s19, 8  ;;  %s547_s19 = scalar_lea.sflag [#allocation4], %s1076_s25 }
  0x5e   : > { %v337_v46 = vrot.slane %v332_v39, %v1114_v9  ;;  %v341_v47 = vrot.slane %v332_v39, %v1116_v10  ;;  %vm372_vm6 = vcmp.lt.s32.totalorder %v1112_v8, 112  ;;  %v381_v6 = vrot.slane %v376_v61, %v1114_v9 }
  0x5f   : > { %282 = vrot.lane.b32.xlu1 %v1090_v1, %s902_s10  ;;  %280 = vrot.lane.b32.xlu0 %v1086_v0, %s902_s10  ;;  %v385_v7 = vrot.slane %v376_v61, %v1116_v10  ;;  %vm394_vm7 = vcmp.lt.s32.totalorder %v1112_v8, 111  ;;  %v229_v8 = vld [vmem:[%s1202_s2] sm:$0xff]  ;;  %s228_s10 = scalar_lea.vmem [#allocation7], %s652_s29 }
  0x63   : > { %304 = vrot.lane.b32.xlu1 %v1090_v1, %s903_s21  ;;  %302 = vrot.lane.b32.xlu0 %v1086_v0, %s903_s21  ;;  %s561_s21 = sshll.u32 %s228_s10, 4  ;;  %s1158_s21 = int_to_ptr.vmem [resolvable:$true] %s561_s21 }
  0x64   : > { %s824_s29 = scalar_lea.vmem %s1158_s21, 256 }
  0x65   : > { %p825_p4 = scmp.ne.s32.totalorder %s1158_s21, %s824_s29 }
  0x67   : > { %326 = vrot.lane.b32.xlu1 %v1090_v1, %s904_s12  ;;  %324 = vrot.lane.b32.xlu0 %v1086_v0, %s904_s12  ;;  %p826_p6 = pnand %p825_p4, %p1027_p12 }
  0x69   : > { %p827_p8 = pneg %p826_p6 }
  0x6b   : > { %348 = vrot.lane.b32.xlu1 %v1090_v1, %s905_s13  ;;  %346 = vrot.lane.b32.xlu0 %v1086_v0, %s905_s13 }
  0x6f   : > { %370 = vrot.lane.b32.xlu1 %v1090_v1, %s908_s14  ;;  %368 = vrot.lane.b32.xlu0 %v1086_v0, %s908_s14  ;;  %s1156_s14 = scalar_lea.hbm %s1204_s4, %s662_s28 }
  0x73   : > { %392 = vrot.lane.b32.xlu1 %v1090_v1, %s909_s20  ;;  %390 = vrot.lane.b32.xlu0 %v1086_v0, %s909_s20  ;;  %s910_s20 = smov [#allocation7]  }
  0x74   : > { %s828_s6 = sshll.u32 %s910_s20, 4  ;;  %s829_s6 = int_to_ptr.vmem [resolvable:$false] %s828_s6 }
  0x75   : > { %s830_s5 = scalar_lea.vmem %s829_s6, 512  ;;  %p831_p10 = scmp.lt.s32.totalorder %s1158_s21, %s829_s6 }
  0x76   : > { %p832_p13 = scmp.lt.s32.totalorder %s830_s5, %s824_s29 }
  0x77   : > { %419 = vperm.xlu1 %759, %v232_v4   ;;  %414 = vperm.xlu0 %758, %v231_v5   ;;  %v359_v4 = vrot.slane %v354_v60, %v1114_v9  ;;  %v363_v5 = vrot.slane %v354_v60, %v1116_v10 }
  0x78   : > { %p833_p3 = por %p832_p13, %p831_p10 }
  0x7a   : > { %p834_p7 = pnand %p833_p3, %p827_p8 }
  0xc9   : > { %v259_v13 = vpop.permute.xlu1 %258  ;;  %v236_v14 = vpop.permute.xlu0 %235 }
  0xcd   : > { %v261_v19 = vpop.permute.xlu1 %260  ;;  %v238_v20 = vpop.permute.xlu0 %237 }
  0xce   : > { %v263_v21 = vsel %vm262_vm0, %v259_v13, %v261_v19  ;;  %v264_v22 = vsel %vm262_vm0, %v261_v19, %v259_v13  ;;  %v242_v23 = vsel %vm241_vm1, %v236_v14, %v238_v20  ;;  %v243_v24 = vsel %vm241_vm1, %v238_v20, %v236_v14 }
  0xcf   : > { %v278_v25 = vmul.f32 %v271_v15, %v264_v22  ;;  %v279_v26 = vmul.f32 %v275_v16, %v263_v21  ;;  %v256_v27 = vmul.f32 %v249_v17, %v243_v24  ;;  %v257_v28 = vmul.f32 %v253_v18, %v242_v23 }
  0xd0   : > { %v407_v16 = vrot.slane %v398_v11, %v1116_v10  ;;  %v403_v21 = vrot.slane %v398_v11, %v1114_v9  ;;  %v230_v9 = vld [vmem:[%s1202_s2 + $0x8] sm:$0xff] }
  0xd1   : > { %v283_v31 = vpop.permute.xlu1 %282  ;;  %v281_v32 = vpop.permute.xlu0 %280  ;;  %v663_v33 = vpack.c.bf16 %v279_v26, %v257_v28  ;;  %v665_v34 = vpack.c.bf16 %v278_v25, %v256_v27 }
  0xd2   : > { %v285_v40 = vsel %vm284_vm2, %v281_v32, %v283_v31  ;;  %v286_v41 = vsel %vm284_vm2, %v283_v31, %v281_v32 }
  0xd3   : > { %664 = vmatprep.subr.bf16.mxu0 %v663_v33  ;;  %679 = vmatprep.subr.bf16.mxu1 %v663_v33  ;;  %v300_v48 = vmul.f32 %v293_v35, %v286_v41  ;;  %v301_v49 = vmul.f32 %v297_v36, %v285_v40 }
  0xd4   : > { %666 = vmatpush1.bf16.msra.mxu0 %v665_v34  ;;  %684 = vmatpush1.bf16.msra.mxu1 %v665_v34 }
  0xd5   : > { %v305_v42 = vpop.permute.xlu1 %304  ;;  %v303_v43 = vpop.permute.xlu0 %302 }
  0xd6   : > { %v307_v44 = vsel %vm306_vm3, %v303_v43, %v305_v42  ;;  %v308_v45 = vsel %vm306_vm3, %v305_v42, %v303_v43 }
  0xd7   : > { %v322_v50 = vmul.f32 %v315_v37, %v308_v45  ;;  %v323_v51 = vmul.f32 %v319_v38, %v307_v44 }
  0xd9   : > { %v327_v52 = vpop.permute.xlu1 %326  ;;  %v325_v53 = vpop.permute.xlu0 %324  ;;  %v667_v54 = vpack.c.bf16 %v323_v51, %v301_v49  ;;  %v669_v55 = vpack.c.bf16 %v322_v50, %v300_v48 }
  0xda   : > { %v329_v56 = vsel %vm328_vm4, %v325_v53, %v327_v52  ;;  %v330_v57 = vsel %vm328_vm4, %v327_v52, %v325_v53 }
  0xdb   : > { %v344_v58 = vmul.f32 %v337_v46, %v329_v56  ;;  %v345_v59 = vmul.f32 %v341_v47, %v330_v57  ;;  %668 = vmatprep.subr.bf16.mxu0 %v667_v54  ;;  %680 = vmatprep.subr.bf16.mxu1 %v667_v54 }
  0xdc   : > { %670 = vmatpush1.bf16.msra.mxu0 %v669_v55  ;;  %685 = vmatpush1.bf16.msra.mxu1 %v669_v55 }
  0xdd   : > { %v349_v62 = vpop.permute.xlu1 %348  ;;  %v347_v63 = vpop.permute.xlu0 %346  ;;  %v671_v2 = vpack.c.bf16 %v345_v59, %v1090_v1  ;;  %v673_v3 = vpack.c.bf16 %v344_v58, %v1086_v0 }
  0xde   : > { %v351_v12 = vsel %vm350_vm5, %v347_v63, %v349_v62  ;;  %v352_v13 = vsel %vm350_vm5, %v349_v62, %v347_v63 }
  0xdf   : > { %672 = vmatprep.subr.bf16.mxu0 %v671_v2  ;;  %681 = vmatprep.subr.bf16.mxu1 %v671_v2  ;;  %v366_v17 = vmul.f32 %v359_v4, %v351_v12  ;;  %v367_v18 = vmul.f32 %v363_v5, %v352_v13 }
  0xe0   : > { %674 = vmatpush1.bf16.msra.mxu0 %v673_v3  ;;  %686 = vmatpush1.bf16.msra.mxu1 %v673_v3 }
  0xe1   : > { %v371_v1 = vpop.permute.xlu1 %370  ;;  %v369_v14 = vpop.permute.xlu0 %368 }
  0xe2   : > { %v373_v0 = vsel %vm372_vm6, %v369_v14, %v371_v1  ;;  %v374_v15 = vsel %vm372_vm6, %v371_v1, %v369_v14 }
  0xe3   : > { %v388_v19 = vmul.f32 %v381_v6, %v373_v0  ;;  %v389_v20 = vmul.f32 %v385_v7, %v374_v15 }
  0xe5   : > { %v393_v22 = vpop.permute.xlu1 %392  ;;  %v675_v23 = vpack.c.bf16 %v389_v20, %v367_v18  ;;  %v391_v24 = vpop.permute.xlu0 %390  ;;  %v677_v25 = vpack.c.bf16 %v388_v19, %v366_v17 }
  0xe6   : > { %v395_v26 = vsel %vm394_vm7, %v391_v24, %v393_v22  ;;  %v396_v27 = vsel %vm394_vm7, %v393_v22, %v391_v24 }
  0xe7   : > { %676 = vmatprep.subr.bf16.mxu0 %v675_v23  ;;  %682 = vmatprep.subr.bf16.mxu1 %v675_v23  ;;  %v411_v28 = vmul.f32 %v407_v16, %v396_v27  ;;  %v410_v29 = vmul.f32 %v403_v21, %v395_v26 }
  0xe8   : > { %678 = vmatpush1.bf16.msra.mxu0 %v677_v25  ;;  %687 = vmatpush1.bf16.msra.mxu1 %v677_v25 }
  0xe9   : > { %445 = vmatprep.subr.mxu0 %v411_v28  ;;  %683 = vmatprep.subr.mxu1 %v411_v28 }
  0xec   : > { %446 = vmatpush1.msra.mxu0 %v410_v29  ;;  %688 = vmatpush1.msra.mxu1 %v410_v29 }
  0xed   : > { %654 = vmatmul.mubr.msk.f32.vlgmr.msra.gmra.mrb[0].mxu0 %vm422_vm8, %v229_v8  ;;  %655 = vmatmul.mubr.msk.f32.vlgmr.msra.gmra.mrb[0].mxu1 %vm422_vm8, %v230_v9 }
  0xf6   : > { %v420_v10 = vpop.permute.xlu1 %419  ;;  %v415_v30 = vpop.permute.xlu0 %414 }
 0x1c0   : > { %v495_v31 = vpop.f32.mrb[0].mxu0  ;;  %v501_v32 = vpop.f32.mrb[0].mxu1 }
 0x1c1   : > { %v496_v33 = vadd.f32 %v495_v31, %v415_v30  ;;  %v502_v34 = vadd.f32 %v501_v32, %v420_v10  ;;  %v497_v35 = vpop.f32.mrb[1].mxu0  ;;  %v503_v36 = vpop.f32.mrb[1].mxu1 }
 0x1c2   : > { %v498_v37 = vadd.f32 %v497_v35, %v415_v30  ;;  %v504_v38 = vadd.f32 %v503_v36, %v420_v10 }
 0x1c4   : > { %v509_v39 = vadd.f32 %v504_v38, %v502_v34  ;;  %v506_v40 = vadd.f32 %v498_v37, %v496_v33 }
 0x1c6   : > { %510 = vadd.xlane.f32.xlu0 %v509_v39  ;;  %507 = vadd.xlane.f32.xlu1 %v506_v40 }
 0x253   : > { %v511_v41 = vpop.xlane.xlu0 %510  ;;  %v508_v42 = vpop.xlane.xlu1 %507 }
 0x254   : > { %v514_v43 = vmul.f32 0.00390625, %v511_v41  ;;  %v513_v44 = vmul.f32 0.00390625, %v508_v42 }
 0x256   : > { %v515_v45 = vmax.f32 %v513_v44, %v514_v43 }
 0x258   : > { %v516_v46 = vrot.slane %v515_v45, 4 }
 0x25a   : > { %v517_v47 = vmax.f32 %v515_v45, %v516_v46 }
 0x25c   : > { %v518_v48 = vrot.slane %v517_v47, 2 }
 0x25e   : > { %v519_v49 = vmax.f32 %v517_v47, %v518_v48 }
 0x260   : > { %v520_v50 = vrot.slane %v519_v49, 1 }
 0x262   : > { %v521_v51 = vmax.f32 %v519_v49, %v520_v50 }
 0x264   : > { %v522_v52 = vsub.f32 %v513_v44, %v521_v51  ;;  %v523_v53 = vsub.f32 %v514_v43, %v521_v51 }
 0x266   : > { %v524_v54 = vmul.f32 1.442695, %v522_v52  ;;  %v526_v55 = vmul.f32 1.442695, %v523_v53 }
 0x268   : > { %760 = vpow2.f32 %v524_v54 }
 0x269   : > { %762 = vpow2.f32 %v526_v55 }
 0x272   : > { %v761_v56 = vpop.eup %760 }
 0x273   : > { %v763_v57 = vpop.eup %762 }
 0x274   : > { %v528_v58 = vadd.f32 %v763_v57, %v761_v56 }
 0x276   : > { %v529_v59 = vrot.slane %v528_v58, 4 }
 0x278   : > { %v530_v60 = vadd.f32 %v529_v59, %v528_v58 }
 0x27a   : > { %v531_v61 = vrot.slane %v530_v60, 2 }
 0x27c   : > { %v532_v62 = vadd.f32 %v531_v61, %v530_v60 }
 0x27e   : > { %v533_v63 = vrot.slane %v532_v62, 1 }
 0x280   : > { %v534_v2 = vadd.f32 %v533_v63, %v532_v62 }
 0x282   : > { %764 = vrcp.f32 %v534_v2 }
 0x28c   : > { %v765_v3 = vpop.eup %764 }
 0x28d   : > { %v536_v4 = vmul.f32 %v765_v3, %v761_v56  ;;  %v537_v5 = vmul.f32 %v765_v3, %v763_v57 }
 0x28f   : > { %v538_v6 = vmul.f32 %v536_v4, %v496_v33  ;;  %v539_v7 = vmul.f32 %v536_v4, %v498_v37  ;;  %v540_v11 = vmul.f32 %v537_v5, %v502_v34  ;;  %v541_v12 = vmul.f32 %v537_v5, %v504_v38 }
 0x291   : > { %v542_v13 = vadd.f32 %v540_v11, %v538_v6  ;;  %v543_v1 = vadd.f32 %v541_v12, %v539_v7 }
 0x293   : > { %544 = vst [vmem:[%s228_s10] sm:$0xff] %v542_v13  ;;  %545 = vst [vmem:[%s228_s10 + $0x8] sm:$0xff] %v543_v1 }
 0x294   : > { %837 = shalt.err (!%p834_p7)
}
 0x295   : > { %s838_s25 = scalar_lea.hbm %s1156_s14, 256  ;;  %s842_s8 = scalar_lea.hbm %s1204_s4, 512 }
 0x296   : > { %p839_p9 = scmp.ne.s32.totalorder %s1156_s14, %s838_s25  ;;  %p843_p0 = scmp.lt.u32.totalorder %s1156_s14, %s1204_s4 }
 0x297   : > { %p844_p1 = scmp.lt.u32.totalorder %s842_s8, %s838_s25  ;;  %p846_p4 = scmp.lt.u32.totalorder %s838_s25, %s1156_s14 }
 0x298   : > { %p840_p2 = pnand %p839_p9, %p1027_p12 }
 0x299   : > { %p845_p11 = por %p844_p1, %p843_p0 }
 0x29a   : > { %p841_p5 = pneg %p840_p2 }
 0x29b   : > { %p847_p6 = por %p846_p4, %p845_p11 }
 0x29d   : > { %p848_p8 = pnand %p847_p6, %p841_p5 }
 0x29f   : > { %851 = shalt.err (!%p848_p8)
}
 0x2a0   : > { %695 = dma.vmem_to_hbm [thread:$0]  (%p1027_p12), %s1158_s21, 256, %s1156_s14, %s547_s19  }
 0x2a1 PF: > { %s573_s23 = sand.u32 1, %s882_s15   ;;  %p1219_p10 = scmp.ne.s32.totalorder %s1209_s22, 0 }
 0x2a2   : > { %p1220_p13 = scmp.ge.s32.totalorder %s894_s18, 2  ;;  %s574_s28 = scalar_lea.sflag [#allocation4], %s573_s23 }
 0x2a4   : > { %p706_p3 = pnand %p1220_p13, %p1219_p10 }
 0x2a6   : > { %877 = dma.done.wait (!%p706_p3), %s574_s28, 256  }
 0x2a7   : > { %879 = vsyncadd (!%p706_p3), %s574_s28, 4294967040  ;;  %p18_p7 = scmp.ge.s32.totalorder %s992_s27, 4   ;;  %s1221_s15 = smov %s886_s16 }
 0x2a8   : > { %s1222_s16 = smov %s890_s17  ;;  %s1223_s17 = smov %s1023_s24 }
 0x2a9   : > { %s1224_s18 = smov %s992_s27  ;;  %20 = sbr.rel (!%p18_p7) target bundleno = 6 (0x6), region = 93 }
 0x2b0   :  { %579 = vsyncpa [#allocation3], 1 }
 0x2b1   :  { %581 = vsyncpa [#allocation3 + $0x1], 1 }
 0x2b2   :  { %582 = vsyncpa [#allocation6], 1 }
 0x2b3   :  { %584 = vsyncpa [#allocation6 + $0x1], 1 }
 0x2b4   :  { %585 = vsyncpa [#allocation4], 1 }
 0x2b5   :  { %587 = vsyncpa [#allocation4 + $0x1], 1 }

</bundles_post_ra>
